<compile_context>
chip_gen: v7x
topology: tpu7x:2x2x1
jax: 0.10.0
libtpu: 0.0.40
codegen_flags: <defaults>
</compile_context>

<pallas_src>
import jax
import jax.numpy as jnp
from jax.experimental import pallas as pl
from jax.experimental.pallas import tpu as pltpu


def _round_up(n: int, m: int) -> int:
    return ((n + m - 1) // m) * m


def _make_mlp_kernel(num_hidden: int):
    """Fused MLP kernel for `num_hidden` equal-width hidden layers."""

    def kernel(x_ref, *refs):
        # refs layout: w_in, b_in, (w_h, b_h) * num_hidden, w_out, b_out, o_ref
        o_ref = refs[-1]
        w_in, b_in = refs[0], refs[1]

        # Input layer + activation (standardization already folded into w_in/b_in).
        h = jnp.tanh(
            jnp.dot(x_ref[...], w_in[...], preferred_element_type=jnp.float32)
            + b_in[...]
        )

        # Hidden layers + activation.
        for i in range(num_hidden):
            w = refs[2 + 2 * i]
            b = refs[3 + 2 * i]
            h = jnp.tanh(
                jnp.dot(h, w[...], preferred_element_type=jnp.float32) + b[...]
            )

        # Output layer (no activation).  Lane-dense [tb, Op] store.
        w_out = refs[2 + 2 * num_hidden]
        b_out = refs[3 + 2 * num_hidden]
        out = jnp.dot(h, w_out[...], preferred_element_type=jnp.float32) + b_out[...]
        o_ref[...] = out.astype(o_ref.dtype)

    return kernel


def standard_net_forward(x, params, *, block_batch=None, single_buffer_weights=True):
    """Fused Standard_Net forward pass as a single pallas_call.

    params: dict with
      input_mean [D], input_std [D],
      w_in [D, H], b_in [H],
      hidden: list of (w [H, H], b [H]),
      w_out [H, O], b_out [O]
    Weights are stored [in_features, out_features] so h @ W + b matches
    PyTorch's x @ W.T + b with W stored [out, in].
    """
    B, D = x.shape
    H = params["w_in"].shape[1]
    O = params["w_out"].shape[1]
    num_hidden = len(params["hidden"])
    dtype = x.dtype
    itemsize = jnp.dtype(dtype).itemsize

    # The Torch module chains Linear(n, n) for each topology entry, which only
    # works when all hidden widths are equal.
    for (w, _b) in params["hidden"]:
        assert w.shape == (H, H), "Standard_Net requires a uniform hidden width."

    # ---- Fold (x - mean) / std into the first linear layer (zero runtime cost).
    inv_std = 1.0 / params["input_std"]
    w_in_f = params["w_in"] * inv_std[:, None]
    b_in_f = params["b_in"] - (params["input_mean"] * inv_std) @ params["w_in"]

    # ---- Pad hidden / output widths to 128 lanes (zero padding is exact).
    Hp = _round_up(H, 128)
    Op = _round_up(O, 128)

    def pad2(a, rows, cols):
        return jnp.pad(a, ((0, rows - a.shape[0]), (0, cols - a.shape[1])))

    def pad_bias(b, cols):
        return jnp.pad(b, (0, cols - b.shape[0])).reshape(1, cols)

    w_in_p = pad2(w_in_f, D, Hp)
    b_in_p = pad_bias(b_in_f, Hp)
    hidden_p = [(pad2(w, Hp, Hp), pad_bias(b, Hp)) for (w, b) in params["hidden"]]
    w_out_p = pad2(params["w_out"], Hp, Op)
    b_out_p = pad_bias(params["b_out"], Op)

    # ---- Batch tiling: tb multiple of 8 (f32 sublane), capped for VMEM, and
    #      >= 2 grid steps whenever possible so v7x's two TensorCores both work.
    Bp = _round_up(B, 8)
    tb = min(512 if block_batch is None else int(block_batch), Bp)
    tb = max(8, _round_up(tb, 8))
    if Bp // tb < 2 and Bp >= 16:
        tb = _round_up(Bp // 2, 8)
    Bp = _round_up(Bp, tb)
    grid = (Bp // tb,)

    x_p = jnp.pad(x, ((0, Bp - B), (0, 0)))

    # ---- Operands and BlockSpecs.
    weight_kwargs = {"pipeline_mode": pl.Buffered(1)} if single_buffer_weights else {}

    def resident_spec(shape):
        # Whole-array block, constant index map (parameters resident in VMEM).
        return pl.BlockSpec(shape, lambda i: (0, 0), **weight_kwargs)

    operands = [x_p, w_in_p, b_in_p]
    in_specs = [
        pl.BlockSpec((tb, D), lambda i: (i, 0)),  # x: tiled over batch
        resident_spec((D, Hp)),
        resident_spec((1, Hp)),
    ]
    for (w, b) in hidden_p:
        operands += [w, b]
        in_specs += [resident_spec((Hp, Hp)), resident_spec((1, Hp))]
    operands += [w_out_p, b_out_p]
    in_specs += [resident_spec((Hp, Op)), resident_spec((1, Op))]

    out_spec = pl.BlockSpec((tb, Op), lambda i: (i, 0))  # lane-dense output slab

    # ---- Cost estimate (helps XLA schedule around the custom call).
    weight_bytes = sum(int(op.size) * jnp.dtype(op.dtype).itemsize
                       for op in operands[1:])
    flops = 2 * Bp * (D * Hp + num_hidden * Hp * Hp + Hp * Op)
    transcendentals = Bp * Hp * (num_hidden + 1)
    bytes_accessed = int(x_p.size) * itemsize + weight_bytes + Bp * Op * itemsize
    cost = pl.CostEstimate(
        flops=int(flops),
        transcendentals=int(transcendentals),
        bytes_accessed=int(bytes_accessed),
    )

    # ---- VMEM budget: weights (1x or 2x buffered) + double-buffered x/out
    #      tiles + activation headroom.  Clamp to [16 MiB, 64 MiB] (v5e default
    #      scoped limit is only 16 MiB; v7x physical VMEM is 64 MiB per core).
    buf_mult = 1 if single_buffer_weights else 2
    tile_bytes = 2 * (tb * D + tb * Op) * itemsize + 4 * tb * Hp * itemsize
    vmem_needed = buf_mult * weight_bytes + tile_bytes + (4 << 20)
    vmem_limit = int(min(max(vmem_needed, 16 << 20), 64 << 20))

    kernel = _make_mlp_kernel(num_hidden)

    out_p = pl.pallas_call(
        kernel,
        out_shape=jax.ShapeDtypeStruct((Bp, Op), dtype),
        grid_spec=pltpu.PrefetchScalarGridSpec(
            num_scalar_prefetch=0,
            grid=grid,
            in_specs=in_specs,
            out_specs=out_spec,
        ),
        compiler_params=pltpu.CompilerParams(
            dimension_semantics=("parallel",),
            vmem_limit_bytes=vmem_limit,
        ),
        cost_estimate=cost,
    )(*operands)

    return out_p[:B, :O]


def standard_net_reference(x, params):
    """Pure-JAX reference matching the PyTorch forward exactly."""
    h = (x - params["input_mean"]) / params["input_std"]
    h = jnp.tanh(h @ params["w_in"] + params["b_in"])
    for (w, b) in params["hidden"]:
        h = jnp.tanh(h @ w + b)
    return h @ params["w_out"] + params["b_out"]


def init_params(key, input_dim, net_topology, output_dim):
    """Deterministic synthetic parameter initialization (matches the Torch
    module's layer structure: input D->topology[0], one Linear(n, n) per
    topology entry, output topology[-1]->output_dim)."""
    params = {}
    params["input_mean"] = jnp.zeros((input_dim,), jnp.float32)
    params["input_std"] = jnp.ones((input_dim,), jnp.float32)

    def linear(k, fan_in, fan_out):
        kw, kb = jax.random.split(k)
        bound = 1.0 / jnp.sqrt(fan_in)
        w = jax.random.uniform(kw, (fan_in, fan_out), jnp.float32, -bound, bound)
        b = jax.random.uniform(kb, (fan_out,), jnp.float32, -bound, bound)
        return w, b

    keys = jax.random.split(key, 2 + len(net_topology))
    params["w_in"], params["b_in"] = linear(keys[0], input_dim, net_topology[0])
    params["hidden"] = []
    for i, n_nodes in enumerate(net_topology):
        params["hidden"].append(linear(keys[1 + i], n_nodes, n_nodes))
    params["w_out"], params["b_out"] = linear(keys[-1], net_topology[-1], output_dim)
    return params


if __name__ == "__main__":
    # Small, module-consistent shapes: batch=16 (gives 2 grid steps), input
    # dim 4, net_topology=[32, 32], output dim 3.
    B, D, H, O = 16, 4, 32, 3
    net_topology = [H, H]

    key = jax.random.PRNGKey(0)
    k_x, k_p, k_mean = jax.random.split(key, 3)

    params = init_params(k_p, D, net_topology, O)
    # Non-trivial deterministic standardization buffers (std > 0).
    params["input_mean"] = 0.1 * jax.random.normal(k_mean, (D,), jnp.float32)
    params["input_std"] = jnp.full((D,), 1.5, jnp.float32)

    x = jax.random.normal(k_x, (B, D), jnp.float32)

    try:
        out = jax.block_until_ready(standard_net_forward(x, params))
    except Exception:
        # Fallback in case single-buffered (Buffered(1)) resident weights are
        # rejected by this Pallas version; semantics are identical.
        out = jax.block_until_ready(
            standard_net_forward(x, params, single_buffer_weights=False)
        )

    ref = standard_net_reference(x, params)
    assert out.shape == (B, O)
    assert jnp.allclose(out, ref, atol=1e-5, rtol=1e-5), (
        f"max err {jnp.max(jnp.abs(out - ref))}"
    )

    print("KERNEL_OK")
</pallas_src>

<mosaic_0001>
module attributes {stable_mosaic.version = 11 : i64} {
  func.func @kernel(%arg0: i32, %arg1: memref<8x4xf32, #tpu.memory_space<vmem>>, %arg2: memref<4x128xf32, #tpu.memory_space<vmem>>, %arg3: memref<1x128xf32, #tpu.memory_space<vmem>>, %arg4: memref<128x128xf32, #tpu.memory_space<vmem>>, %arg5: memref<1x128xf32, #tpu.memory_space<vmem>>, %arg6: memref<128x128xf32, #tpu.memory_space<vmem>>, %arg7: memref<1x128xf32, #tpu.memory_space<vmem>>, %arg8: memref<128x128xf32, #tpu.memory_space<vmem>>, %arg9: memref<1x128xf32, #tpu.memory_space<vmem>>, %arg10: memref<8x128xf32, #tpu.memory_space<vmem>>) attributes {dimension_semantics = [#tpu.dimension_semantics<parallel>], iteration_bounds = array<i64: 2>, scalar_prefetch = 0 : i64, scratch_operands = 0 : i64, tpu.core_type = #tpu.core_type<tc>, window_params = [{transform_indices = @transform_0, window_bounds = array<i64: 8, 4>}, {pipeline_mode = #tpu.pipeline_mode<synchronous>, transform_indices = @transform_1, window_bounds = array<i64: 4, 128>}, {pipeline_mode = #tpu.pipeline_mode<synchronous>, transform_indices = @transform_2, window_bounds = array<i64: 1, 128>}, {pipeline_mode = #tpu.pipeline_mode<synchronous>, transform_indices = @transform_3, window_bounds = array<i64: 128, 128>}, {pipeline_mode = #tpu.pipeline_mode<synchronous>, transform_indices = @transform_4, window_bounds = array<i64: 1, 128>}, {pipeline_mode = #tpu.pipeline_mode<synchronous>, transform_indices = @transform_5, window_bounds = array<i64: 128, 128>}, {pipeline_mode = #tpu.pipeline_mode<synchronous>, transform_indices = @transform_6, window_bounds = array<i64: 1, 128>}, {pipeline_mode = #tpu.pipeline_mode<synchronous>, transform_indices = @transform_7, window_bounds = array<i64: 128, 128>}, {pipeline_mode = #tpu.pipeline_mode<synchronous>, transform_indices = @transform_8, window_bounds = array<i64: 1, 128>}, {transform_indices = @transform_9, window_bounds = array<i64: 8, 128>}]} {
    %c0 = arith.constant 0 : index
    %c0_0 = arith.constant 0 : index
    %0 = vector.load %arg1[%c0, %c0_0] : memref<8x4xf32, #tpu.memory_space<vmem>>, vector<8x4xf32>
    %c0_1 = arith.constant 0 : index
    %c0_2 = arith.constant 0 : index
    %1 = vector.load %arg2[%c0_1, %c0_2] : memref<4x128xf32, #tpu.memory_space<vmem>>, vector<4x128xf32>
    %cst = arith.constant dense<0.000000e+00> : vector<8x128xf32>
    %2 = tpu.matmul %0, %1, %cst {dimension_numbers = #tpu.dot_dimension_numbers<[1], [0], [0], [1], [0, 0, 1, 1], [], []>} : vector<8x4xf32>, vector<4x128xf32>, vector<8x128xf32> -> vector<8x128xf32>
    %c0_3 = arith.constant 0 : index
    %c0_4 = arith.constant 0 : index
    %3 = vector.load %arg3[%c0_3, %c0_4] : memref<1x128xf32, #tpu.memory_space<vmem>>, vector<1x128xf32>
    %4 = vector.broadcast %3 : vector<1x128xf32> to vector<8x128xf32>
    %5 = arith.addf %2, %4 : vector<8x128xf32>
    %6 = math.tanh %5 : vector<8x128xf32>
    %c0_5 = arith.constant 0 : index
    %c0_6 = arith.constant 0 : index
    %7 = vector.load %arg4[%c0_5, %c0_6] : memref<128x128xf32, #tpu.memory_space<vmem>>, vector<128x128xf32>
    %cst_7 = arith.constant dense<0.000000e+00> : vector<8x128xf32>
    %8 = tpu.matmul %6, %7, %cst_7 {dimension_numbers = #tpu.dot_dimension_numbers<[1], [0], [0], [1], [0, 0, 1, 1], [], []>} : vector<8x128xf32>, vector<128x128xf32>, vector<8x128xf32> -> vector<8x128xf32>
    %c0_8 = arith.constant 0 : index
    %c0_9 = arith.constant 0 : index
    %9 = vector.load %arg5[%c0_8, %c0_9] : memref<1x128xf32, #tpu.memory_space<vmem>>, vector<1x128xf32>
    %10 = vector.broadcast %9 : vector<1x128xf32> to vector<8x128xf32>
    %11 = arith.addf %8, %10 : vector<8x128xf32>
    %12 = math.tanh %11 : vector<8x128xf32>
    %c0_10 = arith.constant 0 : index
    %c0_11 = arith.constant 0 : index
    %13 = vector.load %arg6[%c0_10, %c0_11] : memref<128x128xf32, #tpu.memory_space<vmem>>, vector<128x128xf32>
    %cst_12 = arith.constant dense<0.000000e+00> : vector<8x128xf32>
    %14 = tpu.matmul %12, %13, %cst_12 {dimension_numbers = #tpu.dot_dimension_numbers<[1], [0], [0], [1], [0, 0, 1, 1], [], []>} : vector<8x128xf32>, vector<128x128xf32>, vector<8x128xf32> -> vector<8x128xf32>
    %c0_13 = arith.constant 0 : index
    %c0_14 = arith.constant 0 : index
    %15 = vector.load %arg7[%c0_13, %c0_14] : memref<1x128xf32, #tpu.memory_space<vmem>>, vector<1x128xf32>
    %16 = vector.broadcast %15 : vector<1x128xf32> to vector<8x128xf32>
    %17 = arith.addf %14, %16 : vector<8x128xf32>
    %18 = math.tanh %17 : vector<8x128xf32>
    %c0_15 = arith.constant 0 : index
    %c0_16 = arith.constant 0 : index
    %19 = vector.load %arg8[%c0_15, %c0_16] : memref<128x128xf32, #tpu.memory_space<vmem>>, vector<128x128xf32>
    %cst_17 = arith.constant dense<0.000000e+00> : vector<8x128xf32>
    %20 = tpu.matmul %18, %19, %cst_17 {dimension_numbers = #tpu.dot_dimension_numbers<[1], [0], [0], [1], [0, 0, 1, 1], [], []>} : vector<8x128xf32>, vector<128x128xf32>, vector<8x128xf32> -> vector<8x128xf32>
    %c0_18 = arith.constant 0 : index
    %c0_19 = arith.constant 0 : index
    %21 = vector.load %arg9[%c0_18, %c0_19] : memref<1x128xf32, #tpu.memory_space<vmem>>, vector<1x128xf32>
    %22 = vector.broadcast %21 : vector<1x128xf32> to vector<8x128xf32>
    %23 = arith.addf %20, %22 : vector<8x128xf32>
    %c0_20 = arith.constant 0 : index
    %c0_21 = arith.constant 0 : index
    %24 = vector.load %arg10[%c0_20, %c0_21] : memref<8x128xf32, #tpu.memory_space<vmem>>, vector<8x128xf32>
    tpu.vector_store %arg10[%c0_20, %c0_21], %23 {strides = array<i32>} : memref<8x128xf32, #tpu.memory_space<vmem>>, vector<8x128xf32>,
    return
  }
  func.func @transform_0(%arg0: i32) -> (i32, i32) {
    %c0_i32 = arith.constant 0 : i32
    %c0_i32_0 = arith.constant 0 : i32
    return %arg0, %c0_i32 : i32, i32
  }
  func.func @transform_1(%arg0: i32) -> (i32, i32) {
    %c0_i32 = arith.constant 0 : i32
    %c0_i32_0 = arith.constant 0 : i32
    %c0_i32_1 = arith.constant 0 : i32
    return %c0_i32, %c0_i32_0 : i32, i32
  }
  func.func @transform_2(%arg0: i32) -> (i32, i32) {
    %c0_i32 = arith.constant 0 : i32
    %c0_i32_0 = arith.constant 0 : i32
    %c0_i32_1 = arith.constant 0 : i32
    return %c0_i32, %c0_i32_0 : i32, i32
  }
  func.func @transform_3(%arg0: i32) -> (i32, i32) {
    %c0_i32 = arith.constant 0 : i32
    %c0_i32_0 = arith.constant 0 : i32
    %c0_i32_1 = arith.constant 0 : i32
    return %c0_i32, %c0_i32_0 : i32, i32
  }
  func.func @transform_4(%arg0: i32) -> (i32, i32) {
    %c0_i32 = arith.constant 0 : i32
    %c0_i32_0 = arith.constant 0 : i32
    %c0_i32_1 = arith.constant 0 : i32
    return %c0_i32, %c0_i32_0 : i32, i32
  }
  func.func @transform_5(%arg0: i32) -> (i32, i32) {
    %c0_i32 = arith.constant 0 : i32
    %c0_i32_0 = arith.constant 0 : i32
    %c0_i32_1 = arith.constant 0 : i32
    return %c0_i32, %c0_i32_0 : i32, i32
  }
  func.func @transform_6(%arg0: i32) -> (i32, i32) {
    %c0_i32 = arith.constant 0 : i32
    %c0_i32_0 = arith.constant 0 : i32
    %c0_i32_1 = arith.constant 0 : i32
    return %c0_i32, %c0_i32_0 : i32, i32
  }
  func.func @transform_7(%arg0: i32) -> (i32, i32) {
    %c0_i32 = arith.constant 0 : i32
    %c0_i32_0 = arith.constant 0 : i32
    %c0_i32_1 = arith.constant 0 : i32
    return %c0_i32, %c0_i32_0 : i32, i32
  }
  func.func @transform_8(%arg0: i32) -> (i32, i32) {
    %c0_i32 = arith.constant 0 : i32
    %c0_i32_0 = arith.constant 0 : i32
    %c0_i32_1 = arith.constant 0 : i32
    return %c0_i32, %c0_i32_0 : i32, i32
  }
  func.func @transform_9(%arg0: i32) -> (i32, i32) {
    %c0_i32 = arith.constant 0 : i32
    %c0_i32_0 = arith.constant 0 : i32
    return %arg0, %c0_i32 : i32, i32
  }
}

module attributes {stable_mosaic.version = 11 : i64} {
  func.func @kernel(%arg0: i32, %arg1: memref<8x4xf32, #tpu.memory_space<vmem>>, %arg2: memref<4x128xf32, #tpu.memory_space<vmem>>, %arg3: memref<1x128xf32, #tpu.memory_space<vmem>>, %arg4: memref<128x128xf32, #tpu.memory_space<vmem>>, %arg5: memref<1x128xf32, #tpu.memory_space<vmem>>, %arg6: memref<128x128xf32, #tpu.memory_space<vmem>>, %arg7: memref<1x128xf32, #tpu.memory_space<vmem>>, %arg8: memref<128x128xf32, #tpu.memory_space<vmem>>, %arg9: memref<1x128xf32, #tpu.memory_space<vmem>>, %arg10: memref<8x128xf32, #tpu.memory_space<vmem>>) attributes {dimension_semantics = [#tpu.dimension_semantics<parallel>], iteration_bounds = array<i64: 2>, scalar_prefetch = 0 : i64, scratch_operands = 0 : i64, tpu.core_type = #tpu.core_type<tc>, window_params = [{transform_indices = @transform_0, window_bounds = array<i64: 8, 4>}, {pipeline_mode = #tpu.pipeline_mode<synchronous>, transform_indices = @transform_1, window_bounds = array<i64: 4, 128>}, {pipeline_mode = #tpu.pipeline_mode<synchronous>, transform_indices = @transform_2, window_bounds = array<i64: 1, 128>}, {pipeline_mode = #tpu.pipeline_mode<synchronous>, transform_indices = @transform_3, window_bounds = array<i64: 128, 128>}, {pipeline_mode = #tpu.pipeline_mode<synchronous>, transform_indices = @transform_4, window_bounds = array<i64: 1, 128>}, {pipeline_mode = #tpu.pipeline_mode<synchronous>, transform_indices = @transform_5, window_bounds = array<i64: 128, 128>}, {pipeline_mode = #tpu.pipeline_mode<synchronous>, transform_indices = @transform_6, window_bounds = array<i64: 1, 128>}, {pipeline_mode = #tpu.pipeline_mode<synchronous>, transform_indices = @transform_7, window_bounds = array<i64: 128, 128>}, {pipeline_mode = #tpu.pipeline_mode<synchronous>, transform_indices = @transform_8, window_bounds = array<i64: 1, 128>}, {transform_indices = @transform_9, window_bounds = array<i64: 8, 128>}]} {
    %c0 = arith.constant 0 : index
    %c0_0 = arith.constant 0 : index
    %0 = vector.load %arg1[%c0, %c0_0] : memref<8x4xf32, #tpu.memory_space<vmem>>, vector<8x4xf32>
    %c0_1 = arith.constant 0 : index
    %c0_2 = arith.constant 0 : index
    %1 = vector.load %arg2[%c0_1, %c0_2] : memref<4x128xf32, #tpu.memory_space<vmem>>, vector<4x128xf32>
    %cst = arith.constant dense<0.000000e+00> : vector<8x128xf32>
    %2 = tpu.matmul %0, %1, %cst {dimension_numbers = #tpu.dot_dimension_numbers<[1], [0], [0], [1], [0, 0, 1, 1], [], []>} : vector<8x4xf32>, vector<4x128xf32>, vector<8x128xf32> -> vector<8x128xf32>
    %c0_3 = arith.constant 0 : index
    %c0_4 = arith.constant 0 : index
    %3 = vector.load %arg3[%c0_3, %c0_4] : memref<1x128xf32, #tpu.memory_space<vmem>>, vector<1x128xf32>
    %4 = vector.broadcast %3 : vector<1x128xf32> to vector<8x128xf32>
    %5 = arith.addf %2, %4 : vector<8x128xf32>
    %6 = math.tanh %5 : vector<8x128xf32>
    %c0_5 = arith.constant 0 : index
    %c0_6 = arith.constant 0 : index
    %7 = vector.load %arg4[%c0_5, %c0_6] : memref<128x128xf32, #tpu.memory_space<vmem>>, vector<128x128xf32>
    %cst_7 = arith.constant dense<0.000000e+00> : vector<8x128xf32>
    %8 = tpu.matmul %6, %7, %cst_7 {dimension_numbers = #tpu.dot_dimension_numbers<[1], [0], [0], [1], [0, 0, 1, 1], [], []>} : vector<8x128xf32>, vector<128x128xf32>, vector<8x128xf32> -> vector<8x128xf32>
    %c0_8 = arith.constant 0 : index
    %c0_9 = arith.constant 0 : index
    %9 = vector.load %arg5[%c0_8, %c0_9] : memref<1x128xf32, #tpu.memory_space<vmem>>, vector<1x128xf32>
    %10 = vector.broadcast %9 : vector<1x128xf32> to vector<8x128xf32>
    %11 = arith.addf %8, %10 : vector<8x128xf32>
    %12 = math.tanh %11 : vector<8x128xf32>
    %c0_10 = arith.constant 0 : index
    %c0_11 = arith.constant 0 : index
    %13 = vector.load %arg6[%c0_10, %c0_11] : memref<128x128xf32, #tpu.memory_space<vmem>>, vector<128x128xf32>
    %cst_12 = arith.constant dense<0.000000e+00> : vector<8x128xf32>
    %14 = tpu.matmul %12, %13, %cst_12 {dimension_numbers = #tpu.dot_dimension_numbers<[1], [0], [0], [1], [0, 0, 1, 1], [], []>} : vector<8x128xf32>, vector<128x128xf32>, vector<8x128xf32> -> vector<8x128xf32>
    %c0_13 = arith.constant 0 : index
    %c0_14 = arith.constant 0 : index
    %15 = vector.load %arg7[%c0_13, %c0_14] : memref<1x128xf32, #tpu.memory_space<vmem>>, vector<1x128xf32>
    %16 = vector.broadcast %15 : vector<1x128xf32> to vector<8x128xf32>
    %17 = arith.addf %14, %16 : vector<8x128xf32>
    %18 = math.tanh %17 : vector<8x128xf32>
    %c0_15 = arith.constant 0 : index
    %c0_16 = arith.constant 0 : index
    %19 = vector.load %arg8[%c0_15, %c0_16] : memref<128x128xf32, #tpu.memory_space<vmem>>, vector<128x128xf32>
    %cst_17 = arith.constant dense<0.000000e+00> : vector<8x128xf32>
    %20 = tpu.matmul %18, %19, %cst_17 {dimension_numbers = #tpu.dot_dimension_numbers<[1], [0], [0], [1], [0, 0, 1, 1], [], []>} : vector<8x128xf32>, vector<128x128xf32>, vector<8x128xf32> -> vector<8x128xf32>
    %c0_18 = arith.constant 0 : index
    %c0_19 = arith.constant 0 : index
    %21 = vector.load %arg9[%c0_18, %c0_19] : memref<1x128xf32, #tpu.memory_space<vmem>>, vector<1x128xf32>
    %22 = vector.broadcast %21 : vector<1x128xf32> to vector<8x128xf32>
    %23 = arith.addf %20, %22 : vector<8x128xf32>
    %c0_20 = arith.constant 0 : index
    %c0_21 = arith.constant 0 : index
    %24 = vector.load %arg10[%c0_20, %c0_21] : memref<8x128xf32, #tpu.memory_space<vmem>>, vector<8x128xf32>
    tpu.vector_store %arg10[%c0_20, %c0_21], %23 {strides = array<i32>} : memref<8x128xf32, #tpu.memory_space<vmem>>, vector<8x128xf32>,
    return
  }
  func.func @transform_0(%arg0: i32) -> (i32, i32) {
    %c0_i32 = arith.constant 0 : i32
    %c0_i32_0 = arith.constant 0 : i32
    return %arg0, %c0_i32 : i32, i32
  }
  func.func @transform_1(%arg0: i32) -> (i32, i32) {
    %c0_i32 = arith.constant 0 : i32
    %c0_i32_0 = arith.constant 0 : i32
    %c0_i32_1 = arith.constant 0 : i32
    return %c0_i32, %c0_i32_0 : i32, i32
  }
  func.func @transform_2(%arg0: i32) -> (i32, i32) {
    %c0_i32 = arith.constant 0 : i32
    %c0_i32_0 = arith.constant 0 : i32
    %c0_i32_1 = arith.constant 0 : i32
    return %c0_i32, %c0_i32_0 : i32, i32
  }
  func.func @transform_3(%arg0: i32) -> (i32, i32) {
    %c0_i32 = arith.constant 0 : i32
    %c0_i32_0 = arith.constant 0 : i32
    %c0_i32_1 = arith.constant 0 : i32
    return %c0_i32, %c0_i32_0 : i32, i32
  }
  func.func @transform_4(%arg0: i32) -> (i32, i32) {
    %c0_i32 = arith.constant 0 : i32
    %c0_i32_0 = arith.constant 0 : i32
    %c0_i32_1 = arith.constant 0 : i32
    return %c0_i32, %c0_i32_0 : i32, i32
  }
  func.func @transform_5(%arg0: i32) -> (i32, i32) {
    %c0_i32 = arith.constant 0 : i32
    %c0_i32_0 = arith.constant 0 : i32
    %c0_i32_1 = arith.constant 0 : i32
    return %c0_i32, %c0_i32_0 : i32, i32
  }
  func.func @transform_6(%arg0: i32) -> (i32, i32) {
    %c0_i32 = arith.constant 0 : i32
    %c0_i32_0 = arith.constant 0 : i32
    %c0_i32_1 = arith.constant 0 : i32
    return %c0_i32, %c0_i32_0 : i32, i32
  }
  func.func @transform_7(%arg0: i32) -> (i32, i32) {
    %c0_i32 = arith.constant 0 : i32
    %c0_i32_0 = arith.constant 0 : i32
    %c0_i32_1 = arith.constant 0 : i32
    return %c0_i32, %c0_i32_0 : i32, i32
  }
  func.func @transform_8(%arg0: i32) -> (i32, i32) {
    %c0_i32 = arith.constant 0 : i32
    %c0_i32_0 = arith.constant 0 : i32
    %c0_i32_1 = arith.constant 0 : i32
    return %c0_i32, %c0_i32_0 : i32, i32
  }
  func.func @transform_9(%arg0: i32) -> (i32, i32) {
    %c0_i32 = arith.constant 0 : i32
    %c0_i32_0 = arith.constant 0 : i32
    return %arg0, %c0_i32 : i32, i32
  }
}

</mosaic_0001>

<bundles_post_ra>
// kernel: tpu_custom_call.1
= control target key start
LH: loop header
LB: loop body
LE: loop exit
PB: predicated region body
PF: predicated region fallthrough
CT: control target
= control target key end

     0   :  { %14 = vsyncpa [#allocation3], 0  ;;  %s1656_s0 = inlined_call_operand.vmem [shape: f32[16,4], index: 0, kind: input, shape index: {}]   ;;  %s1657_s1 = inlined_call_operand.vmem [shape: f32[4,128], index: 1, kind: input, shape index: {}]   ;;  %s1658_s2 = inlined_call_operand.vmem [shape: f32[1,128], index: 2, kind: input, shape index: {}]   ;;  %s1659_s3 = inlined_call_operand.hbm [shape: f32[128,128], index: 3, kind: input, shape index: {}]   ;;  %s1660_s4 = inlined_call_operand.vmem [shape: f32[1,128], index: 4, kind: input, shape index: {}]   ;;  %s1661_s5 = inlined_call_operand.hbm [shape: f32[128,128], index: 5, kind: input, shape index: {}]   ;;  %s1662_s6 = inlined_call_operand.vmem [shape: f32[1,128], index: 6, kind: input, shape index: {}]   ;;  %s1663_s7 = inlined_call_operand.hbm [shape: f32[128,128], index: 7, kind: input, shape index: {}]   ;;  %s1664_s8 = inlined_call_operand.vmem [shape: f32[1,128], index: 8, kind: input, shape index: {}]   ;;  %s1665_s9 = inlined_call_operand.hbm [shape: f32[16,128], index: 9, kind: output, shape index: {}]  }
   0x1   :  { %15 = vsyncpa [#allocation6], 0 }
   0x2   :  { %16 = vsyncpa [#allocation4], 0 }
   0x3   :  { %18 = vsyncpa [#allocation4 + $0x1], 0  ;;  %s1399_s30 = smov 0   ;;  %s1401_s10 = smov 0  }
   0x4   :  { %s1403_s11 = smov 0   ;;  %s1405_s12 = smov 0  }
   0x5 LB: > { %1674 = sst [smem:[#allocation12_spill]] %s1326_s30  ;;  %s1420_s13 = sadd.s32 4294967295, %s1338_s12   ;;  %s1338_s12 = sphi %s1405_s12, %s1693_s12   ;;  %s1334_s11 = sphi %s1403_s11, %s1695_s11   ;;  %s1330_s10 = sphi %s1401_s10, %s1697_s10   ;;  %s1326_s30 = sphi %s1399_s30, %s1696_s30  }
   0x6   : > { %1675 = sst [smem:[#allocation13_spill]] %s1334_s11  ;;  %s846_s14 = sadd.s32 4294967294, %s1338_s12  }
   0x7   : > { %s1424_s15 = sadd.s32 1, %s1338_s12   ;;  %s225_s16 = sadd.s32 1, %s1334_s11 }
   0x8   : > { %1676 = sst [smem:[#allocation14_spill]] %s1424_s15  ;;  %s222_s17 = ssub.s32 %s1338_s12, %s1424_s15 }
   0x9   : > { %p235_p0 = scmp.ne.s32.totalorder %s1334_s11, %s1330_s10  ;;  %p223_p1 = scmp.eq.s32.totalorder %s222_s17, 0 }
   0xa   : > { %p236_p2 = scmp.eq.s32.totalorder %s1420_s13, 1  ;;  %p241_p3 = scmp.ne.s32.totalorder %s1330_s10, %s1326_s30 }
   0xb   : > { %p242_p4 = scmp.eq.s32.totalorder %s846_s14, 1  ;;  %p847_p7 = scmp.ge.s32.totalorder %s1338_s12, 1 }
   0xc   : > { %s1435_s18 = scalar_select %p223_p1, %s1334_s11, %s225_s16  }
   0xd   : > { %p1437_p5 = por %p236_p2, %p235_p0  ;;  %p1441_p6 = por %p242_p4, %p241_p3 }
   0xe   : > { %1677 = sst [smem:[#allocation15_spill]] %s1435_s18  ;;  %p249_p8 = scmp.lt.s32.totalorder %s1338_s12, 3 }
   0xf   : > { %s1678_s19 = scalar_select %p1437_p5, 1, 0 }
  0x10   : > { %s1679_s20 = scalar_select %p1441_p6, 1, 0 }
  0x11   : > { %p1666_p9 = scmp.eq.s32.totalorder %s1420_s13, 0  ;;  %p1448_p10 = pnand %p847_p7, %p249_p8 }
  0x12   : > { %1680 = sst [smem:[#allocation16_spill]] %s1679_s20  ;;  %s1340_s22 = smov [#allocation5]  }
  0x13   : > { %s1681_s21 = scalar_select %p1448_p10, 1, 0 }
  0x14   : > { %p1117_p11 = pneg %p1448_p10  ;;  %s283_s23 = sshll.u32 %s1340_s22, 4  ;;  %s1454_s23 = int_to_ptr.vmem [resolvable:$true] %s283_s23 }
  0x15   : > { %s1341_s25 = smov [#allocation2]   ;;  %s1342_s27 = smov [#allocation7]  }
  0x16   : > { %p1458_p12 = pnand %p1666_p9, %p1117_p11  ;;  %s267_s26 = sshll.u32 %s1341_s25, 4  ;;  %s1462_s26 = int_to_ptr.vmem [resolvable:$true] %s267_s26 }
  0x17   : > { %s1464_s28 = sshll.u32 %s1342_s27, 4  ;;  %s1184_s16 = scalar_lea.hbm %s1661_s5, 2048  ;;  %s300_s28 = int_to_ptr.vmem [resolvable:$true] %s1464_s28 }
  0x18   : > { %p1185_p13 = scmp.ne.s32.totalorder %s1661_s5, %s1184_s16  ;;  %p1474_p0 = pneg %p1458_p12 }
  0x19   : > { %p1191_p3 = scmp.lt.u32.totalorder %s1184_s16, %s1661_s5 }
  0x1a   : > { %p1187_p1 = pnand %p1474_p0, %p1185_p13 }
  0x1c   : > { %p1188_p2 = pneg %p1187_p1 }
  0x1e   : > { %p1193_p4 = pnand %p1191_p3, %p1188_p2 }
  0x20   : > { %1196 = shalt.err (!%p1193_p4)
}
  0x21   : > { %s1197_s29 = scalar_lea.vmem %s1454_s23, 2048  ;;  %p1205_p9 = scmp.lt.s32.totalorder %s1454_s23, %s1454_s23 }
  0x22   : > { %p1198_p7 = scmp.ne.s32.totalorder %s1454_s23, %s1197_s29  ;;  %p1206_p6 = scmp.lt.s32.totalorder %s1197_s29, %s1197_s29 }
  0x24   : > { %p1200_p8 = pnand %p1198_p7, %p1474_p0  ;;  %p1207_p13 = por %p1206_p6, %p1205_p9 }
  0x26   : > { %p1201_p11 = pneg %p1200_p8 }
  0x28   : > { %p1208_p1 = pnand %p1207_p13, %p1201_p11 }
  0x2a   : > { %1211 = shalt.err (!%p1208_p1)
}
  0x2b   : > { %s1343_s14 = smov 128   ;;  %s1344_s16 = smov 8  }
  0x2c   : > { %1123 = dma.hbm_to_vmem [thread:$0]  (!%p1458_p12), %s1661_s5, 2048, %s1454_s23, [#allocation6], %s1343_s14, %s1343_s14, %s1344_s16  }
  0x2d   : > { %s1212_s29 = scalar_lea.hbm %s1659_s3, 2048 }
  0x2e   : > { %p1213_p6 = scmp.ne.s32.totalorder %s1659_s3, %s1212_s29  ;;  %p1219_p3 = scmp.lt.u32.totalorder %s1212_s29, %s1659_s3 }
  0x30   : > { %p1215_p9 = pnand %p1213_p6, %p1474_p0 }
  0x32   : > { %p1216_p2 = pneg %p1215_p9 }
  0x34   : > { %p1221_p4 = pnand %p1219_p3, %p1216_p2 }
  0x36   : > { %1224 = shalt.err (!%p1221_p4)
}
  0x37   : > { %s1225_s23 = scalar_lea.vmem %s1462_s26, 2048  ;;  %p1233_p13 = scmp.lt.s32.totalorder %s1462_s26, %s1462_s26 }
  0x38   : > { %p1226_p7 = scmp.ne.s32.totalorder %s1462_s26, %s1225_s23  ;;  %p1234_p1 = scmp.lt.s32.totalorder %s1225_s23, %s1225_s23 }
  0x3a   : > { %p1228_p8 = pnand %p1226_p7, %p1474_p0  ;;  %p1235_p6 = por %p1234_p1, %p1233_p13 }
  0x3c   : > { %p1229_p11 = pneg %p1228_p8 }
  0x3e   : > { %p1236_p9 = pnand %p1235_p6, %p1229_p11 }
  0x40   : > { %1239 = shalt.err (!%p1236_p9)
}
  0x41   : > { %1120 = dma.hbm_to_vmem [thread:$0]  (!%p1458_p12), %s1659_s3, 2048, %s1462_s26, [#allocation3], %s1343_s14, %s1343_s14, %s1344_s16  }
  0x42   : > { %s1240_s17 = scalar_lea.hbm %s1663_s7, 2048 }
  0x43   : > { %p1241_p2 = scmp.ne.s32.totalorder %s1663_s7, %s1240_s17  ;;  %p1247_p7 = scmp.lt.u32.totalorder %s1240_s17, %s1663_s7 }
  0x45   : > { %p1243_p3 = pnand %p1241_p2, %p1474_p0 }
  0x47   : > { %p1244_p4 = pneg %p1243_p3 }
  0x49   : > { %p1249_p8 = pnand %p1247_p7, %p1244_p4 }
  0x4b   : > { %1252 = shalt.err (!%p1249_p8)
}
  0x4c   : > { %s1253_s23 = scalar_lea.vmem %s300_s28, 2048  ;;  %p1261_p6 = scmp.lt.s32.totalorder %s300_s28, %s300_s28 }
  0x4d   : > { %p1254_p11 = scmp.ne.s32.totalorder %s300_s28, %s1253_s23  ;;  %p1262_p9 = scmp.lt.s32.totalorder %s1253_s23, %s1253_s23 }
  0x4f   : > { %p1256_p13 = pnand %p1254_p11, %p1474_p0  ;;  %p1263_p5 = por %p1262_p9, %p1261_p6 }
  0x51   : > { %p1257_p1 = pneg %p1256_p13 }
  0x53   : > { %p1264_p10 = pnand %p1263_p5, %p1257_p1 }
  0x55   : > { %1267 = shalt.err (!%p1264_p10)
}
  0x56   : > { %1126 = dma.hbm_to_vmem [thread:$0]  (!%p1458_p12), %s1663_s7, 2048, %s300_s28, [#allocation6], %s1343_s14, %s1343_s14, %s1344_s16  }
  0x57   : > { %p1684_p2 = scmp.ne.s32.totalorder %s1681_s21, 0 }
  0x58   : > { %p1685_p0 = scmp.eq.s32.totalorder (!%p1684_p2), %s1420_s13, 0 }
  0x59   : > { %325 = sbr.rel (%p1684_p2) target bundleno = 1010 (0x3f2), region = 56 }
  0x60   : > { %1313 = dma.done.wait (%p1685_p0), [#allocation3], 2048   ;;  %p1686_p3 = pmov %p1685_p0 }
  0x61   : > { %p1687_p5 = pmov %p1685_p0 }
  0x62   : > { %1315 = vsyncadd (%p1686_p3), [#allocation3], 4294965248 }
  0x63   : > { %1317 = dma.done.wait (%p1687_p5), [#allocation6], 4096   ;;  %p1688_p10 = pmov %p1685_p0 }
  0x64   : > { %p368_p4 = scmp.lt.s32.totalorder %s1420_s13, 1  ;;  %v1345_v0 = vmov 0.0   ;;  %vm1346_vm0 = vmmov 0   ;;  %v1347_v1 = vmov 0.0|0.0   ;;  %vm385_vm1 = vcmask 1043456   ;;  %v460_v4 = vld [vmem:[#allocation2] sm:$0xff] }
  0x65   : > { %1319 = vsyncadd (%p1688_p10), [#allocation6], 4294963200  ;;  %921 = vmatprep.subr.mxu0 %v1345_v0  ;;  %923 = vmatprep.mubr.msk.f32.mxu0 %vm1346_vm0, %v1345_v0  ;;  %vm381_vm2 = vcmask 31744   ;;  %v373_v2 = vld [vmem:[%s1657_s1] sm:$0xf]  ;;  %v462_v6 = vld [vmem:[#allocation2 + $0x10] sm:$0xff] }
  0x66   : > { %s369_s18 = scalar_select %p368_p4, %s1420_s13, 1  ;;  %1031 = vmatprep.subr.bf16.mxu1 %v1347_v1  ;;  %958 = vmatprep.mubr.msk.f32.mxu1 %vm1346_vm0, %v1345_v0  ;;  %v461_v5 = vld [vmem:[#allocation2 + $0x8] sm:$0xff]  ;;  %v463_v7 = vld [vmem:[#allocation2 + $0x18] sm:$0xff]  ;;  %v464_v10 = vld [vmem:[#allocation2 + $0x20] sm:$0xff] }
  0x67   : > { %922 = vmatpush3.msk.msra.mxu0 %vm385_vm1, %v373_v2  ;;  %v1032_v8 = vpack.c.bf16 %v461_v5, %v460_v4  ;;  %v1035_v9 = vpack.c.bf16 %v463_v7, %v462_v6  ;;  %v465_v11 = vld [vmem:[#allocation2 + $0x28] sm:$0xff]  ;;  %v466_v13 = vld [vmem:[#allocation2 + $0x30] sm:$0xff]  ;;  %v467_v14 = vld [vmem:[#allocation2 + $0x38] sm:$0xff]  ;;  %s365_s29 = sand.u32 1, %s1330_s10   ;;  %p1689_p7 = scmp.ne.s32.totalorder %s1678_s19, 0 }
  0x68   : > { %s857_s21 = sshll.u32 %s369_s18, 3  ;;  %1055 = vmatprep.subr.bf16.mxu0 %v1347_v1  ;;  %v1038_v12 = vpack.c.bf16 %v465_v11, %v464_v10  ;;  %v1041_v15 = vpack.c.bf16 %v467_v14, %v466_v13  ;;  %v468_v16 = vld [vmem:[#allocation2 + $0x40] sm:$0xff]  ;;  %v469_v17 = vld [vmem:[#allocation2 + $0x48] sm:$0xff]  ;;  %v470_v19 = vld [vmem:[#allocation2 + $0x50] sm:$0xff]  ;;  %s856_s23 = sshll.u32 %s365_s29, 3 }
  0x69   : > { %s371_s14 = scalar_lea.vmem %s1656_s0, %s857_s21  ;;  %1033 = vmatpush3.bf16.msra.mxu1 %v1032_v8  ;;  %v1044_v18 = vpack.c.bf16 %v469_v17, %v468_v16  ;;  %v471_v20 = vld [vmem:[#allocation2 + $0x58] sm:$0xff]  ;;  %v472_v22 = vld [vmem:[#allocation2 + $0x60] sm:$0xff]  ;;  %v473_v23 = vld [vmem:[#allocation2 + $0x68] sm:$0xff]  ;;  %s865_s18 = sshll.u32 %s1420_s13, 7 }
  0x6a   : > { %v372_v3 = vld [vmem:[%s371_s14] sm:$0xff]  ;;  %1034 = vmatprep.subr.bf16.mxu1 %v1347_v1  ;;  %v1047_v21 = vpack.c.bf16 %v471_v20, %v470_v19  ;;  %v1050_v24 = vpack.c.bf16 %v473_v23, %v472_v22  ;;  %v474_v25 = vld [vmem:[#allocation2 + $0x70] sm:$0xff]  ;;  %v475_v26 = vld [vmem:[#allocation2 + $0x78] sm:$0xff]  ;;  %s367_s21 = scalar_lea.vmem [#allocation8], %s856_s23  ;;  %s1614_s16 = scalar_lea.hbm %s1665_s9, %s865_s18 }
  0x6b   : > { %924 = vmatmul.mubr.msk.f32.vlgmr.msra.gmra.mrb[0].mxu0 %vm381_vm2, %v372_v3  ;;  %v1053_v27 = vpack.c.bf16 %v475_v26, %v474_v25  ;;  %v554_v28 = vld [vmem:[#allocation5] sm:$0xff]  ;;  %v555_v29 = vld [vmem:[#allocation5 + $0x8] sm:$0xff]  ;;  %v556_v30 = vld [vmem:[#allocation5 + $0x10] sm:$0xff]  ;;  %s756_s24 = sshll.u32 %s367_s21, 4  ;;  %s743_s11 = scalar_lea.sflag [#allocation4], %s365_s29  ;;  %s1616_s24 = int_to_ptr.vmem [resolvable:$true] %s756_s24 }
  0x6c   : > { %993 = vmatprep.mubr.msk.f32.mxu0 %vm1346_vm0, %v1345_v0  ;;  %v1056_v31 = vpack.c.bf16 %v555_v29, %v554_v28  ;;  %v557_v32 = vld [vmem:[#allocation5 + $0x18] sm:$0xff]  ;;  %v558_v34 = vld [vmem:[#allocation5 + $0x20] sm:$0xff]  ;;  %v559_v35 = vld [vmem:[#allocation5 + $0x28] sm:$0xff]  ;;  %s1268_s15 = scalar_lea.vmem %s1616_s24, 128  ;;  %s1348_s13 = smov [#allocation8]  }
  0x6d   : > { %1036 = vmatpush3.bf16.msra.mxu1 %v1035_v9  ;;  %v1059_v33 = vpack.c.bf16 %v557_v32, %v556_v30  ;;  %v1062_v36 = vpack.c.bf16 %v559_v35, %v558_v34  ;;  %v560_v37 = vld [vmem:[#allocation5 + $0x30] sm:$0xff]  ;;  %v561_v38 = vld [vmem:[#allocation5 + $0x38] sm:$0xff]  ;;  %v562_v40 = vld [vmem:[#allocation5 + $0x40] sm:$0xff]  ;;  %p1269_p12 = scmp.ne.s32.totalorder %s1616_s24, %s1268_s15  ;;  %s1272_s20 = sshll.u32 %s1348_s13, 4  ;;  %s1273_s20 = int_to_ptr.vmem [resolvable:$false] %s1272_s20 }
  0x6e   : > { %1037 = vmatprep.subr.bf16.mxu1 %v1347_v1  ;;  %1057 = vmatpush3.bf16.msra.mxu0 %v1056_v31  ;;  %v1065_v39 = vpack.c.bf16 %v561_v38, %v560_v37  ;;  %v563_v41 = vld [vmem:[#allocation5 + $0x48] sm:$0xff]  ;;  %v564_v48 = vld [vmem:[#allocation5 + $0x50] sm:$0xff]  ;;  %v565_v49 = vld [vmem:[#allocation5 + $0x58] sm:$0xff]  ;;  %s1274_s17 = scalar_lea.vmem %s1273_s20, 256  ;;  %p1275_p13 = scmp.lt.s32.totalorder %s1616_s24, %s1273_s20 }
  0x6f   : > { %1058 = vmatprep.subr.bf16.mxu0 %v1347_v1  ;;  %v1068_v42 = vpack.c.bf16 %v563_v41, %v562_v40  ;;  %v858_v43 = vld [vmem:[%s1658_s2] ss:$0 sm:$0xff]  ;;  %v1071_v50 = vpack.c.bf16 %v565_v49, %v564_v48  ;;  %v566_v51 = vld [vmem:[#allocation5 + $0x60] sm:$0xff]  ;;  %v568_v54 = vld [vmem:[#allocation5 + $0x70] sm:$0xff]  ;;  %p1270_p8 = pnand %p1269_p12, %p1689_p7  ;;  %p1276_p1 = scmp.lt.s32.totalorder %s1274_s17, %s1268_s15 }
  0x70   : > { %v567_v52 = vld [vmem:[#allocation5 + $0x68] sm:$0xff]  ;;  %v569_v55 = vld [vmem:[#allocation5 + $0x78] sm:$0xff]  ;;  %v648_v57 = vld [vmem:[#allocation7] sm:$0xff] }
  0x71   : > { %1039 = vmatpush3.bf16.msra.mxu1 %v1038_v12  ;;  %v1074_v53 = vpack.c.bf16 %v567_v52, %v566_v51  ;;  %v1077_v56 = vpack.c.bf16 %v569_v55, %v568_v54  ;;  %v649_v58 = vld [vmem:[#allocation7 + $0x8] sm:$0xff]  ;;  %v650_v59 = vld [vmem:[#allocation7 + $0x10] sm:$0xff]  ;;  %v651_v61 = vld [vmem:[#allocation7 + $0x18] sm:$0xff]  ;;  %p1271_p11 = pneg %p1270_p8  ;;  %p1277_p6 = por %p1276_p1, %p1275_p13 }
  0x72   : > { %1040 = vmatprep.subr.bf16.mxu1 %v1347_v1  ;;  %1060 = vmatpush3.bf16.msra.mxu0 %v1059_v33  ;;  %v1080_v60 = vpack.c.bf16 %v649_v58, %v648_v57  ;;  %v1083_v62 = vpack.c.bf16 %v651_v61, %v650_v59  ;;  %v652_v63 = vld [vmem:[#allocation7 + $0x20] sm:$0xff]  ;;  %v654_v3 = vld [vmem:[#allocation7 + $0x30] sm:$0xff]  ;;  %v655_v4 = vld [vmem:[#allocation7 + $0x38] sm:$0xff] }
  0x73   : > { %1061 = vmatprep.subr.bf16.mxu0 %v1347_v1  ;;  %v1089_v5 = vpack.c.bf16 %v655_v4, %v654_v3  ;;  %v656_v6 = vld [vmem:[#allocation7 + $0x40] sm:$0xff]  ;;  %v657_v7 = vld [vmem:[#allocation7 + $0x48] sm:$0xff]  ;;  %v658_v14 = vld [vmem:[#allocation7 + $0x50] sm:$0xff]  ;;  %p1278_p9 = pnand %p1277_p6, %p1271_p11 }
  0x74   : > { %v1092_v8 = vpack.c.bf16 %v657_v7, %v656_v6  ;;  %v861_v9 = vld [vmem:[%s1660_s4] ss:$0 sm:$0xff]  ;;  %v660_v17 = vld [vmem:[#allocation7 + $0x60] sm:$0xff]  ;;  %v662_v20 = vld [vmem:[#allocation7 + $0x70] sm:$0xff] }
  0x75   : > { %1042 = vmatpush3.bf16.msra.mxu1 %v1041_v15  ;;  %v659_v15 = vld [vmem:[#allocation7 + $0x58] sm:$0xff]  ;;  %v862_v23 = vld [vmem:[%s1662_s6] ss:$0 sm:$0xff] }
  0x76   : > { %1043 = vmatprep.subr.bf16.mxu1 %v1347_v1  ;;  %1063 = vmatpush3.bf16.msra.mxu0 %v1062_v36  ;;  %v1095_v16 = vpack.c.bf16 %v659_v15, %v658_v14  ;;  %v863_v28 = vld [vmem:[%s1664_s8] ss:$0 sm:$0xff] }
  0x77   : > { %1064 = vmatprep.subr.bf16.mxu0 %v1347_v1 }
  0x79   : > { %1045 = vmatpush3.bf16.msra.mxu1 %v1044_v18  ;;  %v661_v18 = vld [vmem:[#allocation7 + $0x68] sm:$0xff] }
  0x7a   : > { %1046 = vmatprep.subr.bf16.mxu1 %v1347_v1  ;;  %1066 = vmatpush3.bf16.msra.mxu0 %v1065_v39  ;;  %v1098_v19 = vpack.c.bf16 %v661_v18, %v660_v17 }
  0x7b   : > { %1067 = vmatprep.subr.bf16.mxu0 %v1347_v1 }
  0x7d   : > { %1048 = vmatpush3.bf16.msra.mxu1 %v1047_v21  ;;  %v663_v21 = vld [vmem:[#allocation7 + $0x78] sm:$0xff] }
  0x7e   : > { %1049 = vmatprep.subr.bf16.mxu1 %v1347_v1  ;;  %1069 = vmatpush3.bf16.msra.mxu0 %v1068_v42  ;;  %v1101_v22 = vpack.c.bf16 %v663_v21, %v662_v20 }
  0x7f   : > { %1070 = vmatprep.subr.bf16.mxu0 %v1347_v1 }
  0x81   : > { %1051 = vmatpush3.bf16.msra.mxu1 %v1050_v24 }
  0x82   : > { %1052 = vmatprep.subr.bf16.mxu1 %v1347_v1  ;;  %1072 = vmatpush3.bf16.msra.mxu0 %v1071_v50 }
  0x83   : > { %1073 = vmatprep.subr.bf16.mxu0 %v1347_v1 }
  0x85   : > { %1054 = vmatpush3.bf16.msra.mxu1 %v1053_v27 }
  0x86   : > { %1079 = vmatprep.subr.bf16.mxu1 %v1347_v1  ;;  %1075 = vmatpush3.bf16.msra.mxu0 %v1074_v53 }
  0x87   : > { %1076 = vmatprep.subr.bf16.mxu0 %v1347_v1 }
  0x8a   : > { %1078 = vmatpush3.bf16.msra.mxu0 %v1077_v56 }
 0x13e   : > { %v455_v44 = vpop.f32.mrb[0].mxu0 }
 0x13f   : > { %v456_v45 = vadd.f32 %v858_v43, %v455_v44  ;;  %v925_v46 = vpop.f32.mrb[1].mxu0 }
 0x141   : > { %1178 = vtanh.f32 %v456_v45 }
 0x14b   : > { %v1179_v47 = vpop.eup %1178 }
 0x14c   : > { %959 = vmatmul.mubr.f32.vlgmr.msra.gmra.mrb[0].mxu1 %v1179_v47 }
 0x14d   : > { %1028 = vmatprep.mubr.msk.f32.mxu1 %vm1346_vm0, %v1345_v0  ;;  %1081 = vmatpush3.bf16.msra.mxu1 %v1080_v60  ;;  %v653_v0 = vld [vmem:[#allocation7 + $0x28] sm:$0xff] }
 0x14e   : > { %1082 = vmatprep.subr.bf16.mxu1 %v1347_v1  ;;  %v1086_v2 = vpack.c.bf16 %v653_v0, %v652_v63 }
 0x151   : > { %1084 = vmatpush3.bf16.msra.mxu1 %v1083_v62 }
 0x152   : > { %1085 = vmatprep.subr.bf16.mxu1 %v1347_v1 }
 0x155   : > { %1087 = vmatpush3.bf16.msra.mxu1 %v1086_v2 }
 0x156   : > { %1088 = vmatprep.subr.bf16.mxu1 %v1347_v1 }
 0x159   : > { %1090 = vmatpush3.bf16.msra.mxu1 %v1089_v5 }
 0x15a   : > { %1091 = vmatprep.subr.bf16.mxu1 %v1347_v1 }
 0x15d   : > { %1093 = vmatpush3.bf16.msra.mxu1 %v1092_v8 }
 0x15e   : > { %1094 = vmatprep.subr.bf16.mxu1 %v1347_v1 }
 0x161   : > { %1096 = vmatpush3.bf16.msra.mxu1 %v1095_v16 }
 0x162   : > { %1097 = vmatprep.subr.bf16.mxu1 %v1347_v1 }
 0x165   : > { %1099 = vmatpush3.bf16.msra.mxu1 %v1098_v19 }
 0x166   : > { %1100 = vmatprep.subr.bf16.mxu1 %v1347_v1 }
 0x169   : > { %1102 = vmatpush3.bf16.msra.mxu1 %v1101_v22 }
 0x21f   : > { %v549_v10 = vpop.f32.mrb[0].mxu1 }
 0x220   : > { %v550_v11 = vadd.f32 %v861_v9, %v549_v10  ;;  %v960_v12 = vpop.f32.mrb[1].mxu1 }
 0x222   : > { %1180 = vtanh.f32 %v550_v11 }
 0x22c   : > { %v1181_v13 = vpop.eup %1180 }
 0x22d   : > { %994 = vmatmul.mubr.f32.vlgmr.msra.gmra.mrb[2].mxu0 %v1181_v13 }
 0x300   : > { %v643_v24 = vpop.f32.mrb[2].mxu0 }
 0x301   : > { %v644_v25 = vadd.f32 %v862_v23, %v643_v24  ;;  %v995_v26 = vpop.f32.mrb[3].mxu0 }
 0x303   : > { %1182 = vtanh.f32 %v644_v25 }
 0x30d   : > { %v1183_v27 = vpop.eup %1182 }
 0x30e   : > { %1029 = vmatmul.mubr.f32.vlgmr.msra.gmra.mrb[2].mxu1 %v1183_v27 }
 0x3e1   : > { %v737_v1 = vpop.f32.mrb[2].mxu1 }
 0x3e2   : > { %v738_v29 = vadd.f32 %v863_v28, %v737_v1  ;;  %v1030_v30 = vpop.f32.mrb[3].mxu1 }
 0x3e4   : > { %741 = vst [vmem:[%s367_s21] sm:$0xff] %v738_v29 }
 0x3e5   : > { %1281 = shalt.err (!%p1278_p9)
}
 0x3e6   : > { %s1282_s22 = scalar_lea.hbm %s1614_s16, 128  ;;  %s1286_s29 = scalar_lea.hbm %s1665_s9, 256 }
 0x3e7   : > { %p1283_p2 = scmp.ne.s32.totalorder %s1614_s16, %s1282_s22  ;;  %p1287_p5 = scmp.lt.u32.totalorder %s1614_s16, %s1665_s9 }
 0x3e8   : > { %p1288_p10 = scmp.lt.u32.totalorder %s1286_s29, %s1282_s22  ;;  %p1290_p12 = scmp.lt.u32.totalorder %s1282_s22, %s1614_s16 }
 0x3e9   : > { %p1284_p0 = pnand %p1283_p2, %p1689_p7 }
 0x3ea   : > { %p1289_p4 = por %p1288_p10, %p1287_p5 }
 0x3eb   : > { %p1285_p3 = pneg %p1284_p0 }
 0x3ec   : > { %p1291_p8 = por %p1290_p12, %p1289_p4 }
 0x3ee   : > { %p1292_p11 = pnand %p1291_p8, %p1285_p3 }
 0x3f0   : > { %1295 = shalt.err (!%p1292_p11)
}
 0x3f1   : > { %1115 = dma.vmem_to_hbm [thread:$0]  (%p1689_p7), %s1616_s24, 128, %s1614_s16, %s743_s11  }
 0x3f2 PF: > { %s1690_s30 = sld [smem:[#allocation12_spill]]  ;;  %s1691_s18 = sld [smem:[#allocation16_spill]] }
 0x3f3   : > { %p1137_p13 = scmp.ge.s32.totalorder %s1338_s12, 2 }
 0x3f8   : > { %s768_s21 = sand.u32 1, %s1690_s30   ;;  %p1692_p1 = scmp.ne.s32.totalorder %s1691_s18, 0 }
 0x3f9   : > { %s769_s28 = scalar_lea.sflag [#allocation4], %s768_s21 }
 0x3fa   : > { %p1128_p6 = pnand %p1137_p13, %p1692_p1 }
 0x3fc   : > { %1321 = dma.done.wait (!%p1128_p6), %s769_s28, 128  }
 0x3fd   : > { %1323 = vsyncadd (!%p1128_p6), %s769_s28, 4294967168  ;;  %s1693_s12 = sld [smem:[#allocation14_spill]]  ;;  %s1694_s14 = sld [smem:[#allocation13_spill]] }
 0x3fe   : > { %s1695_s11 = sld [smem:[#allocation15_spill]]  ;;  %s1696_s30 = smov %s1330_s10 }
 0x403   : > { %p21_p9 = scmp.ge.s32.totalorder %s1693_s12, 4   ;;  %s1697_s10 = smov %s1694_s14 }
 0x405   :  { %23 = sbr.rel (!%p21_p9) target bundleno = 5 (0x5), region = 104 }
 0x40c   :  { %774 = vsyncpa [#allocation3], 1 }
 0x40d   :  { %776 = vsyncpa [#allocation3 + $0x1], 1 }
 0x40e   :  { %777 = vsyncpa [#allocation6], 1 }
 0x40f   :  { %778 = vsyncpa [#allocation4], 1 }
 0x410   :  { %780 = vsyncpa [#allocation4 + $0x1], 1 }

// kernel: tpu_custom_call.1
= control target key start
LH: loop header
LB: loop body
LE: loop exit
PB: predicated region body
PF: predicated region fallthrough
CT: control target
= control target key end

     0   :  { %14 = vsyncpa [#allocation3], 0  ;;  %s1656_s0 = inlined_call_operand.vmem [shape: f32[16,4], index: 0, kind: input, shape index: {}]   ;;  %s1657_s1 = inlined_call_operand.vmem [shape: f32[4,128], index: 1, kind: input, shape index: {}]   ;;  %s1658_s2 = inlined_call_operand.vmem [shape: f32[1,128], index: 2, kind: input, shape index: {}]   ;;  %s1659_s3 = inlined_call_operand.hbm [shape: f32[128,128], index: 3, kind: input, shape index: {}]   ;;  %s1660_s4 = inlined_call_operand.vmem [shape: f32[1,128], index: 4, kind: input, shape index: {}]   ;;  %s1661_s5 = inlined_call_operand.hbm [shape: f32[128,128], index: 5, kind: input, shape index: {}]   ;;  %s1662_s6 = inlined_call_operand.vmem [shape: f32[1,128], index: 6, kind: input, shape index: {}]   ;;  %s1663_s7 = inlined_call_operand.hbm [shape: f32[128,128], index: 7, kind: input, shape index: {}]   ;;  %s1664_s8 = inlined_call_operand.vmem [shape: f32[1,128], index: 8, kind: input, shape index: {}]   ;;  %s1665_s9 = inlined_call_operand.hbm [shape: f32[16,128], index: 9, kind: output, shape index: {}]  }
   0x1   :  { %15 = vsyncpa [#allocation6], 0 }
   0x2   :  { %16 = vsyncpa [#allocation4], 0 }
   0x3   :  { %18 = vsyncpa [#allocation4 + $0x1], 0  ;;  %s1399_s30 = smov 0   ;;  %s1401_s10 = smov 0  }
   0x4   :  { %s1403_s11 = smov 0   ;;  %s1405_s12 = smov 0  }
   0x5 LB: > { %1674 = sst [smem:[#allocation12_spill]] %s1326_s30  ;;  %s1420_s13 = sadd.s32 4294967295, %s1338_s12   ;;  %s1338_s12 = sphi %s1405_s12, %s1693_s12   ;;  %s1334_s11 = sphi %s1403_s11, %s1695_s11   ;;  %s1330_s10 = sphi %s1401_s10, %s1697_s10   ;;  %s1326_s30 = sphi %s1399_s30, %s1696_s30  }
   0x6   : > { %1675 = sst [smem:[#allocation13_spill]] %s1334_s11  ;;  %s846_s14 = sadd.s32 4294967294, %s1338_s12  }
   0x7   : > { %s1424_s15 = sadd.s32 1, %s1338_s12   ;;  %s225_s16 = sadd.s32 1, %s1334_s11 }
   0x8   : > { %1676 = sst [smem:[#allocation14_spill]] %s1424_s15  ;;  %s222_s17 = ssub.s32 %s1338_s12, %s1424_s15 }
   0x9   : > { %p235_p0 = scmp.ne.s32.totalorder %s1334_s11, %s1330_s10  ;;  %p223_p1 = scmp.eq.s32.totalorder %s222_s17, 0 }
   0xa   : > { %p236_p2 = scmp.eq.s32.totalorder %s1420_s13, 1  ;;  %p241_p3 = scmp.ne.s32.totalorder %s1330_s10, %s1326_s30 }
   0xb   : > { %p242_p4 = scmp.eq.s32.totalorder %s846_s14, 1  ;;  %p847_p7 = scmp.ge.s32.totalorder %s1338_s12, 1 }
   0xc   : > { %s1435_s18 = scalar_select %p223_p1, %s1334_s11, %s225_s16  }
   0xd   : > { %p1437_p5 = por %p236_p2, %p235_p0  ;;  %p1441_p6 = por %p242_p4, %p241_p3 }
   0xe   : > { %1677 = sst [smem:[#allocation15_spill]] %s1435_s18  ;;  %p249_p8 = scmp.lt.s32.totalorder %s1338_s12, 3 }
   0xf   : > { %s1678_s19 = scalar_select %p1437_p5, 1, 0 }
  0x10   : > { %s1679_s20 = scalar_select %p1441_p6, 1, 0 }
  0x11   : > { %p1666_p9 = scmp.eq.s32.totalorder %s1420_s13, 0  ;;  %p1448_p10 = pnand %p847_p7, %p249_p8 }
  0x12   : > { %1680 = sst [smem:[#allocation16_spill]] %s1679_s20  ;;  %s1340_s22 = smov [#allocation5]  }
  0x13   : > { %s1681_s21 = scalar_select %p1448_p10, 1, 0 }
  0x14   : > { %p1117_p11 = pneg %p1448_p10  ;;  %s283_s23 = sshll.u32 %s1340_s22, 4  ;;  %s1454_s23 = int_to_ptr.vmem [resolvable:$true] %s283_s23 }
  0x15   : > { %s1341_s25 = smov [#allocation2]   ;;  %s1342_s27 = smov [#allocation7]  }
  0x16   : > { %p1458_p12 = pnand %p1666_p9, %p1117_p11  ;;  %s267_s26 = sshll.u32 %s1341_s25, 4  ;;  %s1462_s26 = int_to_ptr.vmem [resolvable:$true] %s267_s26 }
  0x17   : > { %s1464_s28 = sshll.u32 %s1342_s27, 4  ;;  %s1184_s16 = scalar_lea.hbm %s1661_s5, 2048  ;;  %s300_s28 = int_to_ptr.vmem [resolvable:$true] %s1464_s28 }
  0x18   : > { %p1185_p13 = scmp.ne.s32.totalorder %s1661_s5, %s1184_s16  ;;  %p1474_p0 = pneg %p1458_p12 }
  0x19   : > { %p1191_p3 = scmp.lt.u32.totalorder %s1184_s16, %s1661_s5 }
  0x1a   : > { %p1187_p1 = pnand %p1474_p0, %p1185_p13 }
  0x1c   : > { %p1188_p2 = pneg %p1187_p1 }
  0x1e   : > { %p1193_p4 = pnand %p1191_p3, %p1188_p2 }
  0x20   : > { %1196 = shalt.err (!%p1193_p4)
}
  0x21   : > { %s1197_s29 = scalar_lea.vmem %s1454_s23, 2048  ;;  %p1205_p9 = scmp.lt.s32.totalorder %s1454_s23, %s1454_s23 }
  0x22   : > { %p1198_p7 = scmp.ne.s32.totalorder %s1454_s23, %s1197_s29  ;;  %p1206_p6 = scmp.lt.s32.totalorder %s1197_s29, %s1197_s29 }
  0x24   : > { %p1200_p8 = pnand %p1198_p7, %p1474_p0  ;;  %p1207_p13 = por %p1206_p6, %p1205_p9 }
  0x26   : > { %p1201_p11 = pneg %p1200_p8 }
  0x28   : > { %p1208_p1 = pnand %p1207_p13, %p1201_p11 }
  0x2a   : > { %1211 = shalt.err (!%p1208_p1)
}
  0x2b   : > { %s1343_s14 = smov 128   ;;  %s1344_s16 = smov 8  }
  0x2c   : > { %1123 = dma.hbm_to_vmem [thread:$0]  (!%p1458_p12), %s1661_s5, 2048, %s1454_s23, [#allocation6], %s1343_s14, %s1343_s14, %s1344_s16  }
  0x2d   : > { %s1212_s29 = scalar_lea.hbm %s1659_s3, 2048 }
  0x2e   : > { %p1213_p6 = scmp.ne.s32.totalorder %s1659_s3, %s1212_s29  ;;  %p1219_p3 = scmp.lt.u32.totalorder %s1212_s29, %s1659_s3 }
  0x30   : > { %p1215_p9 = pnand %p1213_p6, %p1474_p0 }
  0x32   : > { %p1216_p2 = pneg %p1215_p9 }
  0x34   : > { %p1221_p4 = pnand %p1219_p3, %p1216_p2 }
  0x36   : > { %1224 = shalt.err (!%p1221_p4)
}
  0x37   : > { %s1225_s23 = scalar_lea.vmem %s1462_s26, 2048  ;;  %p1233_p13 = scmp.lt.s32.totalorder %s1462_s26, %s1462_s26 }
  0x38   : > { %p1226_p7 = scmp.ne.s32.totalorder %s1462_s26, %s1225_s23  ;;  %p1234_p1 = scmp.lt.s32.totalorder %s1225_s23, %s1225_s23 }
  0x3a   : > { %p1228_p8 = pnand %p1226_p7, %p1474_p0  ;;  %p1235_p6 = por %p1234_p1, %p1233_p13 }
  0x3c   : > { %p1229_p11 = pneg %p1228_p8 }
  0x3e   : > { %p1236_p9 = pnand %p1235_p6, %p1229_p11 }
  0x40   : > { %1239 = shalt.err (!%p1236_p9)
}
  0x41   : > { %1120 = dma.hbm_to_vmem [thread:$0]  (!%p1458_p12), %s1659_s3, 2048, %s1462_s26, [#allocation3], %s1343_s14, %s1343_s14, %s1344_s16  }
  0x42   : > { %s1240_s17 = scalar_lea.hbm %s1663_s7, 2048 }
  0x43   : > { %p1241_p2 = scmp.ne.s32.totalorder %s1663_s7, %s1240_s17  ;;  %p1247_p7 = scmp.lt.u32.totalorder %s1240_s17, %s1663_s7 }
  0x45   : > { %p1243_p3 = pnand %p1241_p2, %p1474_p0 }
  0x47   : > { %p1244_p4 = pneg %p1243_p3 }
  0x49   : > { %p1249_p8 = pnand %p1247_p7, %p1244_p4 }
  0x4b   : > { %1252 = shalt.err (!%p1249_p8)
}
  0x4c   : > { %s1253_s23 = scalar_lea.vmem %s300_s28, 2048  ;;  %p1261_p6 = scmp.lt.s32.totalorder %s300_s28, %s300_s28 }
  0x4d   : > { %p1254_p11 = scmp.ne.s32.totalorder %s300_s28, %s1253_s23  ;;  %p1262_p9 = scmp.lt.s32.totalorder %s1253_s23, %s1253_s23 }
  0x4f   : > { %p1256_p13 = pnand %p1254_p11, %p1474_p0  ;;  %p1263_p5 = por %p1262_p9, %p1261_p6 }
  0x51   : > { %p1257_p1 = pneg %p1256_p13 }
  0x53   : > { %p1264_p10 = pnand %p1263_p5, %p1257_p1 }
  0x55   : > { %1267 = shalt.err (!%p1264_p10)
}
  0x56   : > { %1126 = dma.hbm_to_vmem [thread:$0]  (!%p1458_p12), %s1663_s7, 2048, %s300_s28, [#allocation6], %s1343_s14, %s1343_s14, %s1344_s16  }
  0x57   : > { %p1684_p2 = scmp.ne.s32.totalorder %s1681_s21, 0 }
  0x58   : > { %p1685_p0 = scmp.eq.s32.totalorder (!%p1684_p2), %s1420_s13, 0 }
  0x59   : > { %325 = sbr.rel (%p1684_p2) target bundleno = 1010 (0x3f2), region = 56 }
  0x60   : > { %1313 = dma.done.wait (%p1685_p0), [#allocation3], 2048   ;;  %p1686_p3 = pmov %p1685_p0 }
  0x61   : > { %p1687_p5 = pmov %p1685_p0 }
  0x62   : > { %1315 = vsyncadd (%p1686_p3), [#allocation3], 4294965248 }
  0x63   : > { %1317 = dma.done.wait (%p1687_p5), [#allocation6], 4096   ;;  %p1688_p10 = pmov %p1685_p0 }
  0x64   : > { %p368_p4 = scmp.lt.s32.totalorder %s1420_s13, 1  ;;  %v1345_v0 = vmov 0.0   ;;  %vm1346_vm0 = vmmov 0   ;;  %v1347_v1 = vmov 0.0|0.0   ;;  %vm385_vm1 = vcmask 1043456   ;;  %v460_v4 = vld [vmem:[#allocation2] sm:$0xff] }
  0x65   : > { %1319 = vsyncadd (%p1688_p10), [#allocation6], 4294963200  ;;  %921 = vmatprep.subr.mxu0 %v1345_v0  ;;  %923 = vmatprep.mubr.msk.f32.mxu0 %vm1346_vm0, %v1345_v0  ;;  %vm381_vm2 = vcmask 31744   ;;  %v373_v2 = vld [vmem:[%s1657_s1] sm:$0xf]  ;;  %v462_v6 = vld [vmem:[#allocation2 + $0x10] sm:$0xff] }
  0x66   : > { %s369_s18 = scalar_select %p368_p4, %s1420_s13, 1  ;;  %1031 = vmatprep.subr.bf16.mxu1 %v1347_v1  ;;  %958 = vmatprep.mubr.msk.f32.mxu1 %vm1346_vm0, %v1345_v0  ;;  %v461_v5 = vld [vmem:[#allocation2 + $0x8] sm:$0xff]  ;;  %v463_v7 = vld [vmem:[#allocation2 + $0x18] sm:$0xff]  ;;  %v464_v10 = vld [vmem:[#allocation2 + $0x20] sm:$0xff] }
  0x67   : > { %922 = vmatpush3.msk.msra.mxu0 %vm385_vm1, %v373_v2  ;;  %v1032_v8 = vpack.c.bf16 %v461_v5, %v460_v4  ;;  %v1035_v9 = vpack.c.bf16 %v463_v7, %v462_v6  ;;  %v465_v11 = vld [vmem:[#allocation2 + $0x28] sm:$0xff]  ;;  %v466_v13 = vld [vmem:[#allocation2 + $0x30] sm:$0xff]  ;;  %v467_v14 = vld [vmem:[#allocation2 + $0x38] sm:$0xff]  ;;  %s365_s29 = sand.u32 1, %s1330_s10   ;;  %p1689_p7 = scmp.ne.s32.totalorder %s1678_s19, 0 }
  0x68   : > { %s857_s21 = sshll.u32 %s369_s18, 3  ;;  %1055 = vmatprep.subr.bf16.mxu0 %v1347_v1  ;;  %v1038_v12 = vpack.c.bf16 %v465_v11, %v464_v10  ;;  %v1041_v15 = vpack.c.bf16 %v467_v14, %v466_v13  ;;  %v468_v16 = vld [vmem:[#allocation2 + $0x40] sm:$0xff]  ;;  %v469_v17 = vld [vmem:[#allocation2 + $0x48] sm:$0xff]  ;;  %v470_v19 = vld [vmem:[#allocation2 + $0x50] sm:$0xff]  ;;  %s856_s23 = sshll.u32 %s365_s29, 3 }
  0x69   : > { %s371_s14 = scalar_lea.vmem %s1656_s0, %s857_s21  ;;  %1033 = vmatpush3.bf16.msra.mxu1 %v1032_v8  ;;  %v1044_v18 = vpack.c.bf16 %v469_v17, %v468_v16  ;;  %v471_v20 = vld [vmem:[#allocation2 + $0x58] sm:$0xff]  ;;  %v472_v22 = vld [vmem:[#allocation2 + $0x60] sm:$0xff]  ;;  %v473_v23 = vld [vmem:[#allocation2 + $0x68] sm:$0xff]  ;;  %s865_s18 = sshll.u32 %s1420_s13, 7 }
  0x6a   : > { %v372_v3 = vld [vmem:[%s371_s14] sm:$0xff]  ;;  %1034 = vmatprep.subr.bf16.mxu1 %v1347_v1  ;;  %v1047_v21 = vpack.c.bf16 %v471_v20, %v470_v19  ;;  %v1050_v24 = vpack.c.bf16 %v473_v23, %v472_v22  ;;  %v474_v25 = vld [vmem:[#allocation2 + $0x70] sm:$0xff]  ;;  %v475_v26 = vld [vmem:[#allocation2 + $0x78] sm:$0xff]  ;;  %s367_s21 = scalar_lea.vmem [#allocation8], %s856_s23  ;;  %s1614_s16 = scalar_lea.hbm %s1665_s9, %s865_s18 }
  0x6b   : > { %924 = vmatmul.mubr.msk.f32.vlgmr.msra.gmra.mrb[0].mxu0 %vm381_vm2, %v372_v3  ;;  %v1053_v27 = vpack.c.bf16 %v475_v26, %v474_v25  ;;  %v554_v28 = vld [vmem:[#allocation5] sm:$0xff]  ;;  %v555_v29 = vld [vmem:[#allocation5 + $0x8] sm:$0xff]  ;;  %v556_v30 = vld [vmem:[#allocation5 + $0x10] sm:$0xff]  ;;  %s756_s24 = sshll.u32 %s367_s21, 4  ;;  %s743_s11 = scalar_lea.sflag [#allocation4], %s365_s29  ;;  %s1616_s24 = int_to_ptr.vmem [resolvable:$true] %s756_s24 }
  0x6c   : > { %993 = vmatprep.mubr.msk.f32.mxu0 %vm1346_vm0, %v1345_v0  ;;  %v1056_v31 = vpack.c.bf16 %v555_v29, %v554_v28  ;;  %v557_v32 = vld [vmem:[#allocation5 + $0x18] sm:$0xff]  ;;  %v558_v34 = vld [vmem:[#allocation5 + $0x20] sm:$0xff]  ;;  %v559_v35 = vld [vmem:[#allocation5 + $0x28] sm:$0xff]  ;;  %s1268_s15 = scalar_lea.vmem %s1616_s24, 128  ;;  %s1348_s13 = smov [#allocation8]  }
  0x6d   : > { %1036 = vmatpush3.bf16.msra.mxu1 %v1035_v9  ;;  %v1059_v33 = vpack.c.bf16 %v557_v32, %v556_v30  ;;  %v1062_v36 = vpack.c.bf16 %v559_v35, %v558_v34  ;;  %v560_v37 = vld [vmem:[#allocation5 + $0x30] sm:$0xff]  ;;  %v561_v38 = vld [vmem:[#allocation5 + $0x38] sm:$0xff]  ;;  %v562_v40 = vld [vmem:[#allocation5 + $0x40] sm:$0xff]  ;;  %p1269_p12 = scmp.ne.s32.totalorder %s1616_s24, %s1268_s15  ;;  %s1272_s20 = sshll.u32 %s1348_s13, 4  ;;  %s1273_s20 = int_to_ptr.vmem [resolvable:$false] %s1272_s20 }
  0x6e   : > { %1037 = vmatprep.subr.bf16.mxu1 %v1347_v1  ;;  %1057 = vmatpush3.bf16.msra.mxu0 %v1056_v31  ;;  %v1065_v39 = vpack.c.bf16 %v561_v38, %v560_v37  ;;  %v563_v41 = vld [vmem:[#allocation5 + $0x48] sm:$0xff]  ;;  %v564_v48 = vld [vmem:[#allocation5 + $0x50] sm:$0xff]  ;;  %v565_v49 = vld [vmem:[#allocation5 + $0x58] sm:$0xff]  ;;  %s1274_s17 = scalar_lea.vmem %s1273_s20, 256  ;;  %p1275_p13 = scmp.lt.s32.totalorder %s1616_s24, %s1273_s20 }
  0x6f   : > { %1058 = vmatprep.subr.bf16.mxu0 %v1347_v1  ;;  %v1068_v42 = vpack.c.bf16 %v563_v41, %v562_v40  ;;  %v858_v43 = vld [vmem:[%s1658_s2] ss:$0 sm:$0xff]  ;;  %v1071_v50 = vpack.c.bf16 %v565_v49, %v564_v48  ;;  %v566_v51 = vld [vmem:[#allocation5 + $0x60] sm:$0xff]  ;;  %v568_v54 = vld [vmem:[#allocation5 + $0x70] sm:$0xff]  ;;  %p1270_p8 = pnand %p1269_p12, %p1689_p7  ;;  %p1276_p1 = scmp.lt.s32.totalorder %s1274_s17, %s1268_s15 }
  0x70   : > { %v567_v52 = vld [vmem:[#allocation5 + $0x68] sm:$0xff]  ;;  %v569_v55 = vld [vmem:[#allocation5 + $0x78] sm:$0xff]  ;;  %v648_v57 = vld [vmem:[#allocation7] sm:$0xff] }
  0x71   : > { %1039 = vmatpush3.bf16.msra.mxu1 %v1038_v12  ;;  %v1074_v53 = vpack.c.bf16 %v567_v52, %v566_v51  ;;  %v1077_v56 = vpack.c.bf16 %v569_v55, %v568_v54  ;;  %v649_v58 = vld [vmem:[#allocation7 + $0x8] sm:$0xff]  ;;  %v650_v59 = vld [vmem:[#allocation7 + $0x10] sm:$0xff]  ;;  %v651_v61 = vld [vmem:[#allocation7 + $0x18] sm:$0xff]  ;;  %p1271_p11 = pneg %p1270_p8  ;;  %p1277_p6 = por %p1276_p1, %p1275_p13 }
  0x72   : > { %1040 = vmatprep.subr.bf16.mxu1 %v1347_v1  ;;  %1060 = vmatpush3.bf16.msra.mxu0 %v1059_v33  ;;  %v1080_v60 = vpack.c.bf16 %v649_v58, %v648_v57  ;;  %v1083_v62 = vpack.c.bf16 %v651_v61, %v650_v59  ;;  %v652_v63 = vld [vmem:[#allocation7 + $0x20] sm:$0xff]  ;;  %v654_v3 = vld [vmem:[#allocation7 + $0x30] sm:$0xff]  ;;  %v655_v4 = vld [vmem:[#allocation7 + $0x38] sm:$0xff] }
  0x73   : > { %1061 = vmatprep.subr.bf16.mxu0 %v1347_v1  ;;  %v1089_v5 = vpack.c.bf16 %v655_v4, %v654_v3  ;;  %v656_v6 = vld [vmem:[#allocation7 + $0x40] sm:$0xff]  ;;  %v657_v7 = vld [vmem:[#allocation7 + $0x48] sm:$0xff]  ;;  %v658_v14 = vld [vmem:[#allocation7 + $0x50] sm:$0xff]  ;;  %p1278_p9 = pnand %p1277_p6, %p1271_p11 }
  0x74   : > { %v1092_v8 = vpack.c.bf16 %v657_v7, %v656_v6  ;;  %v861_v9 = vld [vmem:[%s1660_s4] ss:$0 sm:$0xff]  ;;  %v660_v17 = vld [vmem:[#allocation7 + $0x60] sm:$0xff]  ;;  %v662_v20 = vld [vmem:[#allocation7 + $0x70] sm:$0xff] }
  0x75   : > { %1042 = vmatpush3.bf16.msra.mxu1 %v1041_v15  ;;  %v659_v15 = vld [vmem:[#allocation7 + $0x58] sm:$0xff]  ;;  %v862_v23 = vld [vmem:[%s1662_s6] ss:$0 sm:$0xff] }
  0x76   : > { %1043 = vmatprep.subr.bf16.mxu1 %v1347_v1  ;;  %1063 = vmatpush3.bf16.msra.mxu0 %v1062_v36  ;;  %v1095_v16 = vpack.c.bf16 %v659_v15, %v658_v14  ;;  %v863_v28 = vld [vmem:[%s1664_s8] ss:$0 sm:$0xff] }
  0x77   : > { %1064 = vmatprep.subr.bf16.mxu0 %v1347_v1 }
  0x79   : > { %1045 = vmatpush3.bf16.msra.mxu1 %v1044_v18  ;;  %v661_v18 = vld [vmem:[#allocation7 + $0x68] sm:$0xff] }
  0x7a   : > { %1046 = vmatprep.subr.bf16.mxu1 %v1347_v1  ;;  %1066 = vmatpush3.bf16.msra.mxu0 %v1065_v39  ;;  %v1098_v19 = vpack.c.bf16 %v661_v18, %v660_v17 }
  0x7b   : > { %1067 = vmatprep.subr.bf16.mxu0 %v1347_v1 }
  0x7d   : > { %1048 = vmatpush3.bf16.msra.mxu1 %v1047_v21  ;;  %v663_v21 = vld [vmem:[#allocation7 + $0x78] sm:$0xff] }
  0x7e   : > { %1049 = vmatprep.subr.bf16.mxu1 %v1347_v1  ;;  %1069 = vmatpush3.bf16.msra.mxu0 %v1068_v42  ;;  %v1101_v22 = vpack.c.bf16 %v663_v21, %v662_v20 }
  0x7f   : > { %1070 = vmatprep.subr.bf16.mxu0 %v1347_v1 }
  0x81   : > { %1051 = vmatpush3.bf16.msra.mxu1 %v1050_v24 }
  0x82   : > { %1052 = vmatprep.subr.bf16.mxu1 %v1347_v1  ;;  %1072 = vmatpush3.bf16.msra.mxu0 %v1071_v50 }
  0x83   : > { %1073 = vmatprep.subr.bf16.mxu0 %v1347_v1 }
  0x85   : > { %1054 = vmatpush3.bf16.msra.mxu1 %v1053_v27 }
  0x86   : > { %1079 = vmatprep.subr.bf16.mxu1 %v1347_v1  ;;  %1075 = vmatpush3.bf16.msra.mxu0 %v1074_v53 }
  0x87   : > { %1076 = vmatprep.subr.bf16.mxu0 %v1347_v1 }
  0x8a   : > { %1078 = vmatpush3.bf16.msra.mxu0 %v1077_v56 }
 0x13e   : > { %v455_v44 = vpop.f32.mrb[0].mxu0 }
 0x13f   : > { %v456_v45 = vadd.f32 %v858_v43, %v455_v44  ;;  %v925_v46 = vpop.f32.mrb[1].mxu0 }
 0x141   : > { %1178 = vtanh.f32 %v456_v45 }
 0x14b   : > { %v1179_v47 = vpop.eup %1178 }
 0x14c   : > { %959 = vmatmul.mubr.f32.vlgmr.msra.gmra.mrb[0].mxu1 %v1179_v47 }
 0x14d   : > { %1028 = vmatprep.mubr.msk.f32.mxu1 %vm1346_vm0, %v1345_v0  ;;  %1081 = vmatpush3.bf16.msra.mxu1 %v1080_v60  ;;  %v653_v0 = vld [vmem:[#allocation7 + $0x28] sm:$0xff] }
 0x14e   : > { %1082 = vmatprep.subr.bf16.mxu1 %v1347_v1  ;;  %v1086_v2 = vpack.c.bf16 %v653_v0, %v652_v63 }
 0x151   : > { %1084 = vmatpush3.bf16.msra.mxu1 %v1083_v62 }
 0x152   : > { %1085 = vmatprep.subr.bf16.mxu1 %v1347_v1 }
 0x155   : > { %1087 = vmatpush3.bf16.msra.mxu1 %v1086_v2 }
 0x156   : > { %1088 = vmatprep.subr.bf16.mxu1 %v1347_v1 }
 0x159   : > { %1090 = vmatpush3.bf16.msra.mxu1 %v1089_v5 }
 0x15a   : > { %1091 = vmatprep.subr.bf16.mxu1 %v1347_v1 }
 0x15d   : > { %1093 = vmatpush3.bf16.msra.mxu1 %v1092_v8 }
 0x15e   : > { %1094 = vmatprep.subr.bf16.mxu1 %v1347_v1 }
 0x161   : > { %1096 = vmatpush3.bf16.msra.mxu1 %v1095_v16 }
 0x162   : > { %1097 = vmatprep.subr.bf16.mxu1 %v1347_v1 }
 0x165   : > { %1099 = vmatpush3.bf16.msra.mxu1 %v1098_v19 }
 0x166   : > { %1100 = vmatprep.subr.bf16.mxu1 %v1347_v1 }
 0x169   : > { %1102 = vmatpush3.bf16.msra.mxu1 %v1101_v22 }
 0x21f   : > { %v549_v10 = vpop.f32.mrb[0].mxu1 }
 0x220   : > { %v550_v11 = vadd.f32 %v861_v9, %v549_v10  ;;  %v960_v12 = vpop.f32.mrb[1].mxu1 }
 0x222   : > { %1180 = vtanh.f32 %v550_v11 }
 0x22c   : > { %v1181_v13 = vpop.eup %1180 }
 0x22d   : > { %994 = vmatmul.mubr.f32.vlgmr.msra.gmra.mrb[2].mxu0 %v1181_v13 }
 0x300   : > { %v643_v24 = vpop.f32.mrb[2].mxu0 }
 0x301   : > { %v644_v25 = vadd.f32 %v862_v23, %v643_v24  ;;  %v995_v26 = vpop.f32.mrb[3].mxu0 }
 0x303   : > { %1182 = vtanh.f32 %v644_v25 }
 0x30d   : > { %v1183_v27 = vpop.eup %1182 }
 0x30e   : > { %1029 = vmatmul.mubr.f32.vlgmr.msra.gmra.mrb[2].mxu1 %v1183_v27 }
 0x3e1   : > { %v737_v1 = vpop.f32.mrb[2].mxu1 }
 0x3e2   : > { %v738_v29 = vadd.f32 %v863_v28, %v737_v1  ;;  %v1030_v30 = vpop.f32.mrb[3].mxu1 }
 0x3e4   : > { %741 = vst [vmem:[%s367_s21] sm:$0xff] %v738_v29 }
 0x3e5   : > { %1281 = shalt.err (!%p1278_p9)
}
 0x3e6   : > { %s1282_s22 = scalar_lea.hbm %s1614_s16, 128  ;;  %s1286_s29 = scalar_lea.hbm %s1665_s9, 256 }
 0x3e7   : > { %p1283_p2 = scmp.ne.s32.totalorder %s1614_s16, %s1282_s22  ;;  %p1287_p5 = scmp.lt.u32.totalorder %s1614_s16, %s1665_s9 }
 0x3e8   : > { %p1288_p10 = scmp.lt.u32.totalorder %s1286_s29, %s1282_s22  ;;  %p1290_p12 = scmp.lt.u32.totalorder %s1282_s22, %s1614_s16 }
 0x3e9   : > { %p1284_p0 = pnand %p1283_p2, %p1689_p7 }
 0x3ea   : > { %p1289_p4 = por %p1288_p10, %p1287_p5 }
 0x3eb   : > { %p1285_p3 = pneg %p1284_p0 }
 0x3ec   : > { %p1291_p8 = por %p1290_p12, %p1289_p4 }
 0x3ee   : > { %p1292_p11 = pnand %p1291_p8, %p1285_p3 }
 0x3f0   : > { %1295 = shalt.err (!%p1292_p11)
}
 0x3f1   : > { %1115 = dma.vmem_to_hbm [thread:$0]  (%p1689_p7), %s1616_s24, 128, %s1614_s16, %s743_s11  }
 0x3f2 PF: > { %s1690_s30 = sld [smem:[#allocation12_spill]]  ;;  %s1691_s18 = sld [smem:[#allocation16_spill]] }
 0x3f3   : > { %p1137_p13 = scmp.ge.s32.totalorder %s1338_s12, 2 }
 0x3f8   : > { %s768_s21 = sand.u32 1, %s1690_s30   ;;  %p1692_p1 = scmp.ne.s32.totalorder %s1691_s18, 0 }
 0x3f9   : > { %s769_s28 = scalar_lea.sflag [#allocation4], %s768_s21 }
 0x3fa   : > { %p1128_p6 = pnand %p1137_p13, %p1692_p1 }
 0x3fc   : > { %1321 = dma.done.wait (!%p1128_p6), %s769_s28, 128  }
 0x3fd   : > { %1323 = vsyncadd (!%p1128_p6), %s769_s28, 4294967168  ;;  %s1693_s12 = sld [smem:[#allocation14_spill]]  ;;  %s1694_s14 = sld [smem:[#allocation13_spill]] }
 0x3fe   : > { %s1695_s11 = sld [smem:[#allocation15_spill]]  ;;  %s1696_s30 = smov %s1330_s10 }
 0x403   : > { %p21_p9 = scmp.ge.s32.totalorder %s1693_s12, 4   ;;  %s1697_s10 = smov %s1694_s14 }
 0x405   :  { %23 = sbr.rel (!%p21_p9) target bundleno = 5 (0x5), region = 104 }
 0x40c   :  { %774 = vsyncpa [#allocation3], 1 }
 0x40d   :  { %776 = vsyncpa [#allocation3 + $0x1], 1 }
 0x40e   :  { %777 = vsyncpa [#allocation6], 1 }
 0x40f   :  { %778 = vsyncpa [#allocation4], 1 }
 0x410   :  { %780 = vsyncpa [#allocation4 + $0x1], 1 }

</bundles_post_ra>
